<compile_context>
chip_gen: v6e
topology: v6e:2x2x1
jax: 0.10.0
libtpu: 0.0.40
codegen_flags: <defaults>
</compile_context>

<pallas_src>
import jax
import jax.numpy as jnp
from jax.experimental import pallas as pl
from jax.experimental.pallas import tpu as pltpu

IN_FEATURES = 784
HIDDEN = 400


def _linear_relu_kernel(x_ref, w_ref, b_ref, o_ref):
    # MXU matmul with bf16 operands, f32 accumulate; bias add + ReLU on VPU.
    h = jnp.dot(x_ref[...], w_ref[...], preferred_element_type=jnp.float32)
    o_ref[...] = jnp.maximum(h + b_ref[...], 0.0).astype(o_ref.dtype)


def prepare_params(w1, b1):
    """One-time param prep (hoisted out of the per-call hot path).

    w1: (784, 400) f32 -> bf16;  b1: (400,) f32 -> (1, 400) f32.
    """
    return w1.astype(jnp.bfloat16), b1.reshape(1, HIDDEN).astype(jnp.float32)


def encoder_forward(x, w1_bf16, b1_row, *, tb=1024):
    """x: (B, 784); w1_bf16: (784, 400) bf16; b1_row: (1, 400) f32 -> (B, 400) f32."""
    B = x.shape[0]

    # bf16 operands at the call boundary (f32 accumulation stays in-kernel).
    x_c = x.astype(jnp.bfloat16)

    if B <= tb:
        TB = B                      # single tile; block dim == full dim -> legal for any B
    else:
        TB = max(8, (tb // 8) * 8)  # sublane-aligned tile; partial last tile is masked
    grid = (pl.cdiv(B, TB),)

    cost = pl.CostEstimate(
        flops=2 * B * IN_FEATURES * HIDDEN,
        transcendentals=0,
        bytes_accessed=(2 * B * IN_FEATURES          # X  (bf16)
                        + 2 * IN_FEATURES * HIDDEN   # W  (bf16, read once)
                        + 4 * HIDDEN                 # b  (f32)
                        + 4 * B * HIDDEN),           # out (f32)
    )

    return pl.pallas_call(
        _linear_relu_kernel,
        out_shape=jax.ShapeDtypeStruct((B, HIDDEN), jnp.float32),
        grid=grid,
        in_specs=[
            # X tile marches over the batch axis.
            pl.BlockSpec((TB, IN_FEATURES), lambda i: (i, 0)),
            # Weight and bias: same block every step -> loaded once, VMEM-resident.
            pl.BlockSpec((IN_FEATURES, HIDDEN), lambda i: (0, 0)),
            pl.BlockSpec((1, HIDDEN), lambda i: (0, 0)),
        ],
        out_specs=pl.BlockSpec((TB, HIDDEN), lambda i: (i, 0)),
        compiler_params=pltpu.CompilerParams(
            dimension_semantics=("parallel",),   # batch tiles are independent
        ),
        cost_estimate=cost,
    )(x_c, w1_bf16, b1_row)


def init_params(key):
    """Deterministic init mimicking nn.Linear default (uniform ±1/sqrt(fan_in))."""
    k_w, k_b = jax.random.split(key)
    bound = 1.0 / jnp.sqrt(jnp.float32(IN_FEATURES))
    w1 = jax.random.uniform(
        k_w, (IN_FEATURES, HIDDEN), jnp.float32, minval=-bound, maxval=bound
    )
    b1 = jax.random.uniform(
        k_b, (HIDDEN,), jnp.float32, minval=-bound, maxval=bound
    )
    return w1, b1


if __name__ == "__main__":
    key = jax.random.PRNGKey(0)
    k_x, k_p = jax.random.split(key)

    B = 8  # small batch
    x = jax.random.normal(k_x, (B, IN_FEATURES), jnp.float32)
    w1, b1 = init_params(k_p)
    w1_bf16, b1_row = prepare_params(w1, b1)

    out = encoder_forward(x, w1_bf16, b1_row)
    out = jax.block_until_ready(out)
    assert out.shape == (B, HIDDEN)

    # Reference with the same bf16 operand rounding, f32 accumulation.
    x_b = x.astype(jnp.bfloat16).astype(jnp.float32)
    w_b = w1.astype(jnp.bfloat16).astype(jnp.float32)
    ref_bf16 = jnp.maximum(x_b @ w_b + b1, 0.0)
    assert jnp.allclose(out, ref_bf16, atol=2e-3, rtol=2e-3)

    # Loose check against the full-f32 torch-equivalent forward.
    ref_f32 = jnp.maximum(x @ w1 + b1, 0.0)
    assert jnp.allclose(out, ref_f32, atol=5e-2, rtol=5e-2)

    print("KERNEL_OK")
</pallas_src>

<mosaic_0001>
module attributes {stable_mosaic.version = 11 : i64} {
  func.func @_linear_relu_kernel(%arg0: i32, %arg1: memref<8x784xbf16, #tpu.memory_space<vmem>>, %arg2: memref<784x400xbf16, #tpu.memory_space<vmem>>, %arg3: memref<1x400xf32, #tpu.memory_space<vmem>>, %arg4: memref<8x400xf32, #tpu.memory_space<vmem>>) attributes {dimension_semantics = [#tpu.dimension_semantics<parallel>], iteration_bounds = array<i64: 1>, scalar_prefetch = 0 : i64, scratch_operands = 0 : i64, tpu.core_type = #tpu.core_type<tc>, window_params = [{transform_indices = @transform_0, window_bounds = array<i64: 8, 784>}, {pipeline_mode = #tpu.pipeline_mode<synchronous>, transform_indices = @transform_1, window_bounds = array<i64: 784, 400>}, {pipeline_mode = #tpu.pipeline_mode<synchronous>, transform_indices = @transform_2, window_bounds = array<i64: 1, 400>}, {transform_indices = @transform_3, window_bounds = array<i64: 8, 400>}]} {
    %c0 = arith.constant 0 : index
    %c0_0 = arith.constant 0 : index
    %0 = vector.load %arg1[%c0, %c0_0] : memref<8x784xbf16, #tpu.memory_space<vmem>>, vector<8x784xbf16>
    %c0_1 = arith.constant 0 : index
    %c0_2 = arith.constant 0 : index
    %1 = vector.load %arg2[%c0_1, %c0_2] : memref<784x400xbf16, #tpu.memory_space<vmem>>, vector<784x400xbf16>
    %cst = arith.constant dense<0.000000e+00> : vector<8x400xf32>
    %2 = tpu.matmul %0, %1, %cst {dimension_numbers = #tpu.dot_dimension_numbers<[1], [0], [0], [1], [0, 0, 1, 1], [], []>} : vector<8x784xbf16>, vector<784x400xbf16>, vector<8x400xf32> -> vector<8x400xf32>
    %c0_3 = arith.constant 0 : index
    %c0_4 = arith.constant 0 : index
    %3 = vector.load %arg3[%c0_3, %c0_4] : memref<1x400xf32, #tpu.memory_space<vmem>>, vector<1x400xf32>
    %4 = vector.broadcast %3 : vector<1x400xf32> to vector<8x400xf32>
    %5 = arith.addf %2, %4 : vector<8x400xf32>
    %cst_5 = arith.constant 0.000000e+00 : f32
    %6 = vector.broadcast %cst_5 : f32 to vector<8x400xf32>
    %7 = arith.maximumf %5, %6 : vector<8x400xf32>
    %c0_6 = arith.constant 0 : index
    %c0_7 = arith.constant 0 : index
    %8 = vector.load %arg4[%c0_6, %c0_7] : memref<8x400xf32, #tpu.memory_space<vmem>>, vector<8x400xf32>
    tpu.vector_store %arg4[%c0_6, %c0_7], %7 {strides = array<i32>} : memref<8x400xf32, #tpu.memory_space<vmem>>, vector<8x400xf32>,
    return
  }
  func.func @transform_0(%arg0: i32) -> (i32, i32) {
    %c0_i32 = arith.constant 0 : i32
    %c0_i32_0 = arith.constant 0 : i32
    return %arg0, %c0_i32 : i32, i32
  }
  func.func @transform_1(%arg0: i32) -> (i32, i32) {
    %c0_i32 = arith.constant 0 : i32
    %c0_i32_0 = arith.constant 0 : i32
    %c0_i32_1 = arith.constant 0 : i32
    return %c0_i32, %c0_i32_0 : i32, i32
  }
  func.func @transform_2(%arg0: i32) -> (i32, i32) {
    %c0_i32 = arith.constant 0 : i32
    %c0_i32_0 = arith.constant 0 : i32
    %c0_i32_1 = arith.constant 0 : i32
    return %c0_i32, %c0_i32_0 : i32, i32
  }
  func.func @transform_3(%arg0: i32) -> (i32, i32) {
    %c0_i32 = arith.constant 0 : i32
    %c0_i32_0 = arith.constant 0 : i32
    return %arg0, %c0_i32 : i32, i32
  }
}

</mosaic_0001>

<bundles_post_ra>
// kernel: tpu_custom_call.1
= control target key start
LH: loop header
LB: loop body
LE: loop exit
PB: predicated region body
PF: predicated region fallthrough
CT: control target
= control target key end

     0   :  { %vm1242_vm0 = vcmask 130048   ;;  %s2793_s0 = inlined_call_operand.vmem [shape: bf16[8,784], index: 0, kind: input, shape index: {}]   ;;  %s2794_s1 = inlined_call_operand.vmem [shape: bf16[784,400], index: 1, kind: input, shape index: {}]   ;;  %s2795_s2 = inlined_call_operand.vmem [shape: f32[1,400], index: 2, kind: input, shape index: {}]   ;;  %s2796_s3 = inlined_call_operand.hbm [shape: f32[8,400], index: 3, kind: output, shape index: {}]  }
   0x1   :  { %v1803_v0 = vld [vmem:[%s2794_s1 + $0xe4] ss:$16 sps:$4 sm:$0xff]   ;;  %v1807_v2 = vld [vmem:[%s2794_s1 + $0xe0] ss:$16 sps:$4 sm:$0xff]   ;;  %v17_v48 = vld [vmem:[%s2793_s0 + $0x8] sm:$0xff] }
   0x2   :  { %v1805_v1 = vld [vmem:[%s2794_s1 + $0x2e4] ss:$16 sps:$4 sm:$0xff]   ;;  %1246 = vmatprep.subr.bf16.mxu0 %v1803_v0  ;;  %v1808_v3 = vld [vmem:[%s2794_s1 + $0x2e0] ss:$16 sps:$4 sm:$0xff]   ;;  %v2300_v51 = vcombine.high %v17_v48, %v17_v48 }
   0x3   :  { %1287 = vmatprep.subr.bf16.mxu1 %v1805_v1  ;;  %v1809_v4 = vld [vmem:[%s2794_s1 + $0xc4] ss:$16 sps:$4 sm:$0xff]   ;;  %1247 = vmatpush1.bf16.msra.mxu0 %v1807_v2  ;;  %v1813_v6 = vld [vmem:[%s2794_s1 + $0xc0] ss:$16 sps:$4 sm:$0xff]  }
   0x4   :  { %1288 = vmatpush1.bf16.msra.mxu1 %v1808_v3  ;;  %v1811_v5 = vld [vmem:[%s2794_s1 + $0x2c4] ss:$16 sps:$4 sm:$0xff]   ;;  %1248 = vmatprep.subr.bf16.mxu0 %v1809_v4  ;;  %v1814_v7 = vld [vmem:[%s2794_s1 + $0x2c0] ss:$16 sps:$4 sm:$0xff]  }
   0x5   :  { %1289 = vmatprep.subr.bf16.mxu1 %v1811_v5  ;;  %v1815_v8 = vld [vmem:[%s2794_s1 + $0xa4] ss:$16 sps:$4 sm:$0xff]   ;;  %v1819_v10 = vld [vmem:[%s2794_s1 + $0xa0] ss:$16 sps:$4 sm:$0xff]   ;;  %1319 = vmatprep.mubr.bf16.mxu1 %v2300_v51 }
   0x6   :  { %v1817_v9 = vld [vmem:[%s2794_s1 + $0x2a4] ss:$16 sps:$4 sm:$0xff]   ;;  %v1820_v11 = vld [vmem:[%s2794_s1 + $0x2a0] ss:$16 sps:$4 sm:$0xff]  }
   0x7   :  { %1249 = vmatpush1.bf16.msra.mxu0 %v1813_v6  ;;  %v1821_v12 = vld [vmem:[%s2794_s1 + $0x84] ss:$16 sps:$4 sm:$0xff]   ;;  %v1825_v14 = vld [vmem:[%s2794_s1 + $0x80] ss:$16 sps:$4 sm:$0xff]  }
   0x8   :  { %1290 = vmatpush1.bf16.msra.mxu1 %v1814_v7  ;;  %1250 = vmatprep.subr.bf16.mxu0 %v1815_v8  ;;  %v1823_v13 = vld [vmem:[%s2794_s1 + $0x284] ss:$16 sps:$4 sm:$0xff]   ;;  %v1826_v15 = vld [vmem:[%s2794_s1 + $0x280] ss:$16 sps:$4 sm:$0xff]   ;;  %v2360_v7 = vcombine.low %v17_v48, %v17_v48  ;;  %v1963_v48 = vld [vmem:[%s2794_s1 + $0x1ec] ss:$16 sps:$4 sm:$0xff]  }
   0x9   :  { %1291 = vmatprep.subr.bf16.mxu1 %v1817_v9  ;;  %v1827_v16 = vld [vmem:[%s2794_s1 + $0x64] ss:$16 sps:$4 sm:$0xff]   ;;  %v1831_v18 = vld [vmem:[%s2794_s1 + $0x60] ss:$16 sps:$4 sm:$0xff]  }
   0xa   :  { %v1829_v17 = vld [vmem:[%s2794_s1 + $0x264] ss:$16 sps:$4 sm:$0xff]   ;;  %v1832_v19 = vld [vmem:[%s2794_s1 + $0x260] ss:$16 sps:$4 sm:$0xff]  }
   0xb   :  { %1251 = vmatpush1.bf16.msra.mxu0 %v1819_v10  ;;  %v1833_v20 = vld [vmem:[%s2794_s1 + $0x44] ss:$16 sps:$4 sm:$0xff]   ;;  %v1837_v22 = vld [vmem:[%s2794_s1 + $0x40] ss:$16 sps:$4 sm:$0xff]  }
   0xc   :  { %1292 = vmatpush1.bf16.msra.mxu1 %v1820_v11  ;;  %1252 = vmatprep.subr.bf16.mxu0 %v1821_v12  ;;  %v1835_v21 = vld [vmem:[%s2794_s1 + $0x244] ss:$16 sps:$4 sm:$0xff]   ;;  %v1838_v23 = vld [vmem:[%s2794_s1 + $0x240] ss:$16 sps:$4 sm:$0xff]   ;;  %v1914_v11 = vld [vmem:[%s2794_s1 + $0xec] ss:$16 sps:$4 sm:$0xff]  }
   0xd   :  { %1293 = vmatprep.subr.bf16.mxu1 %v1823_v13  ;;  %v1839_v24 = vld [vmem:[%s2794_s1 + $0x24] ss:$16 sps:$4 sm:$0xff]   ;;  %v1843_v26 = vld [vmem:[%s2794_s1 + $0x20] ss:$16 sps:$4 sm:$0xff]   ;;  %v2126_v13 = vmov 0  }
   0xe   :  { %v1841_v25 = vld [vmem:[%s2794_s1 + $0x224] ss:$16 sps:$4 sm:$0xff]   ;;  %v1844_v27 = vld [vmem:[%s2794_s1 + $0x220] ss:$16 sps:$4 sm:$0xff]  }
   0xf   :  { %1253 = vmatpush1.bf16.msra.mxu0 %v1825_v14  ;;  %v1845_v28 = vld [vmem:[%s2794_s1 + $0x4] ss:$16 sps:$4 sm:$0xff]   ;;  %v1849_v30 = vld [vmem:[%s2794_s1] ss:$16 sps:$4 sm:$0xff]  }
  0x10   :  { %1294 = vmatpush1.bf16.msra.mxu1 %v1826_v15  ;;  %1254 = vmatprep.subr.bf16.mxu0 %v1827_v16  ;;  %v1847_v29 = vld [vmem:[%s2794_s1 + $0x204] ss:$16 sps:$4 sm:$0xff]   ;;  %v1850_v31 = vld [vmem:[%s2794_s1 + $0x200] ss:$16 sps:$4 sm:$0xff]   ;;  %v1912_v15 = vld [vmem:[%s2794_s1 + $0xe8] ss:$16 sps:$4 sm:$0xff]  }
  0x11   :  { %1295 = vmatprep.subr.bf16.mxu1 %v1829_v17  ;;  %v1851_v32 = vld [vmem:[%s2794_s1 + $0x1e4] ss:$16 sps:$4 sm:$0xff]   ;;  %v1855_v34 = vld [vmem:[%s2794_s1 + $0x1e0] ss:$16 sps:$4 sm:$0xff]   ;;  %v2392_v17 = vld [vmem:[%s2793_s0 + $0x18] ss:$0 sps:$4 sm:$0xff]  }
  0x12   :  { %v1853_v33 = vld [vmem:[%s2794_s1 + $0x3e4] ss:$16 sps:$4 sm:$0xff]   ;;  %v1856_v35 = vld [vmem:[%s2794_s1 + $0x3e0] ss:$16 sps:$4 sm:$0xff]  }
  0x13   :  { %1255 = vmatpush1.bf16.msra.mxu0 %v1831_v18  ;;  %v1857_v36 = vld [vmem:[%s2794_s1 + $0x1c4] ss:$16 sps:$4 sm:$0xff]   ;;  %v1861_v38 = vld [vmem:[%s2794_s1 + $0x1c0] ss:$16 sps:$4 sm:$0xff]   ;;  %v1921_v18 = vld [vmem:[%s2794_s1 + $0xcc] ss:$16 sps:$4 sm:$0xff]  }
  0x14   :  { %1296 = vmatpush1.bf16.msra.mxu1 %v1832_v19  ;;  %1256 = vmatprep.subr.bf16.mxu0 %v1833_v20  ;;  %v1859_v37 = vld [vmem:[%s2794_s1 + $0x3c4] ss:$16 sps:$4 sm:$0xff]   ;;  %v1862_v39 = vld [vmem:[%s2794_s1 + $0x3c0] ss:$16 sps:$4 sm:$0xff]   ;;  %v1919_v20 = vld [vmem:[%s2794_s1 + $0xc8] ss:$16 sps:$4 sm:$0xff]  }
  0x15   :  { %1297 = vmatprep.subr.bf16.mxu1 %v1835_v21  ;;  %v1863_v40 = vld [vmem:[%s2794_s1 + $0x1a4] ss:$16 sps:$4 sm:$0xff]   ;;  %v1867_v42 = vld [vmem:[%s2794_s1 + $0x1a0] ss:$16 sps:$4 sm:$0xff]  }
  0x16   :  { %v1865_v41 = vld [vmem:[%s2794_s1 + $0x3a4] ss:$16 sps:$4 sm:$0xff]   ;;  %v1868_v43 = vld [vmem:[%s2794_s1 + $0x3a0] ss:$16 sps:$4 sm:$0xff]  }
  0x17   :  { %1257 = vmatpush1.bf16.msra.mxu0 %v1837_v22  ;;  %v1869_v44 = vld [vmem:[%s2794_s1 + $0x184] ss:$16 sps:$4 sm:$0xff]   ;;  %v1873_v49 = vld [vmem:[%s2794_s1 + $0x180] ss:$16 sps:$4 sm:$0xff]   ;;  %v1927_v22 = vld [vmem:[%s2794_s1 + $0xac] ss:$16 sps:$4 sm:$0xff]  }
  0x18   :  { %1298 = vmatpush1.bf16.msra.mxu1 %v1838_v23  ;;  %1258 = vmatprep.subr.bf16.mxu0 %v1839_v24  ;;  %v1871_v45 = vld [vmem:[%s2794_s1 + $0x384] ss:$16 sps:$4 sm:$0xff]   ;;  %v1874_v50 = vld [vmem:[%s2794_s1 + $0x380] ss:$16 sps:$4 sm:$0xff]   ;;  %v1925_v24 = vld [vmem:[%s2794_s1 + $0xa8] ss:$16 sps:$4 sm:$0xff]  }
  0x19   :  { %1299 = vmatprep.subr.bf16.mxu1 %v1841_v25  ;;  %v16_v46 = vld [vmem:[%s2793_s0] sm:$0xff] }
  0x1a   :  { %v2289_v47 = vcombine.high %v16_v46, %v16_v46  ;;  %v1875_v52 = vld [vmem:[%s2794_s1 + $0x164] ss:$16 sps:$4 sm:$0xff]   ;;  %v1879_v54 = vld [vmem:[%s2794_s1 + $0x160] ss:$16 sps:$4 sm:$0xff]   ;;  %v2358_v6 = vcombine.low %v16_v46, %v16_v46  ;;  %v1955_v46 = vld [vmem:[%s2794_s1 + $0x8] ss:$16 sps:$4 sm:$0xff]  }
  0x1b   :  { %1259 = vmatpush1.bf16.msra.mxu0 %v1843_v26  ;;  %v1877_v53 = vld [vmem:[%s2794_s1 + $0x364] ss:$16 sps:$4 sm:$0xff]   ;;  %v1880_v55 = vld [vmem:[%s2794_s1 + $0x360] ss:$16 sps:$4 sm:$0xff]   ;;  %v1933_v26 = vld [vmem:[%s2794_s1 + $0x8c] ss:$16 sps:$4 sm:$0xff]  }
  0x1c   :  { %1300 = vmatpush1.bf16.msra.mxu1 %v1844_v27  ;;  %1260 = vmatprep.subr.bf16.mxu0 %v1845_v28  ;;  %v1881_v56 = vld [vmem:[%s2794_s1 + $0x144] ss:$16 sps:$4 sm:$0xff]   ;;  %v1885_v58 = vld [vmem:[%s2794_s1 + $0x140] ss:$16 sps:$4 sm:$0xff]   ;;  %v1931_v28 = vld [vmem:[%s2794_s1 + $0x88] ss:$16 sps:$4 sm:$0xff]  }
  0x1d   :  { %1301 = vmatprep.subr.bf16.mxu1 %v1847_v29  ;;  %1278 = vmatprep.mubr.bf16.mxu0 %v2289_v47  ;;  %v1883_v57 = vld [vmem:[%s2794_s1 + $0x344] ss:$16 sps:$4 sm:$0xff]   ;;  %v1886_v59 = vld [vmem:[%s2794_s1 + $0x340] ss:$16 sps:$4 sm:$0xff]  }
  0x1e   :  { %v1887_v60 = vld [vmem:[%s2794_s1 + $0x124] ss:$16 sps:$4 sm:$0xff]   ;;  %v1891_v62 = vld [vmem:[%s2794_s1 + $0x120] ss:$16 sps:$4 sm:$0xff]  }
  0x1f   :  { %1261 = vmatpush1.bf16.msra.mxu0 %v1849_v30  ;;  %v1889_v61 = vld [vmem:[%s2794_s1 + $0x324] ss:$16 sps:$4 sm:$0xff]   ;;  %v1892_v63 = vld [vmem:[%s2794_s1 + $0x320] ss:$16 sps:$4 sm:$0xff]   ;;  %v1939_v30 = vld [vmem:[%s2794_s1 + $0x6c] ss:$16 sps:$4 sm:$0xff]  }
  0x20   :  { %1302 = vmatpush1.bf16.msra.mxu1 %v1850_v31  ;;  %1262 = vmatprep.subr.bf16.mxu0 %v1851_v32  ;;  %v1893_v0 = vld [vmem:[%s2794_s1 + $0x104] ss:$16 sps:$4 sm:$0xff]   ;;  %v1897_v2 = vld [vmem:[%s2794_s1 + $0x100] ss:$16 sps:$4 sm:$0xff]  }
  0x21   :  { %1303 = vmatprep.subr.bf16.mxu1 %v1853_v33  ;;  %v1895_v1 = vld [vmem:[%s2794_s1 + $0x304] ss:$16 sps:$4 sm:$0xff]   ;;  %v1898_v3 = vld [vmem:[%s2794_s1 + $0x300] ss:$16 sps:$4 sm:$0xff]  }
  0x22   :  { %v1905_v4 = vld [vmem:[%s2794_s1 + $0x4e4] ss:$16 sps:$4 sm:$0xff]   ;;  %v1903_v8 = vld [vmem:[%s2794_s1 + $0x4e0] ss:$16 sps:$4 sm:$0xff]  }
  0x23   :  { %1263 = vmatpush2.bf16.msra.mxu0 %v1855_v34  ;;  %v1908_v5 = vld [vmem:[%s2794_s1 + $0x604] ss:$16 sps:$4 sm:$0xff]   ;;  %v1906_v9 = vld [vmem:[%s2794_s1 + $0x600] ss:$16 sps:$4 sm:$0xff]   ;;  %v1937_v34 = vld [vmem:[%s2794_s1 + $0x68] ss:$16 sps:$4 sm:$0xff]  }
  0x24   :  { %1304 = vmatpush2.bf16.msra.mxu1 %v1856_v35  ;;  %1264 = vmatprep.subr.bf16.mxu0 %v1857_v36  ;;  %v1911_v10 = vld [vmem:[%s2794_s1 + $0x4c4] ss:$16 sps:$4 sm:$0xff]   ;;  %v1909_v12 = vld [vmem:[%s2794_s1 + $0x4c0] ss:$16 sps:$4 sm:$0xff]   ;;  %v1945_v36 = vld [vmem:[%s2794_s1 + $0x4c] ss:$16 sps:$4 sm:$0xff]  }
  0x25   :  { %1305 = vmatprep.subr.bf16.mxu1 %v1859_v37  ;;  %v1917_v14 = vld [vmem:[%s2794_s1 + $0x4a4] ss:$16 sps:$4 sm:$0xff]   ;;  %v1915_v16 = vld [vmem:[%s2794_s1 + $0x4a0] ss:$16 sps:$4 sm:$0xff]  }
  0x26   :  { %v1924_v19 = vld [vmem:[%s2794_s1 + $0x484] ss:$16 sps:$4 sm:$0xff]   ;;  %v1922_v21 = vld [vmem:[%s2794_s1 + $0x480] ss:$16 sps:$4 sm:$0xff]  }
  0x27   :  { %1265 = vmatpush2.bf16.msra.mxu0 %v1861_v38  ;;  %v1930_v23 = vld [vmem:[%s2794_s1 + $0x464] ss:$16 sps:$4 sm:$0xff]   ;;  %v1928_v25 = vld [vmem:[%s2794_s1 + $0x460] ss:$16 sps:$4 sm:$0xff]   ;;  %v1943_v38 = vld [vmem:[%s2794_s1 + $0x48] ss:$16 sps:$4 sm:$0xff]  }
  0x28   :  { %1306 = vmatpush2.bf16.msra.mxu1 %v1862_v39  ;;  %1266 = vmatprep.subr.bf16.mxu0 %v1863_v40  ;;  %v1936_v27 = vld [vmem:[%s2794_s1 + $0x444] ss:$16 sps:$4 sm:$0xff]   ;;  %v1934_v29 = vld [vmem:[%s2794_s1 + $0x440] ss:$16 sps:$4 sm:$0xff]   ;;  %v1951_v40 = vld [vmem:[%s2794_s1 + $0x2c] ss:$16 sps:$4 sm:$0xff]  }
  0x29   :  { %1307 = vmatprep.subr.bf16.mxu1 %v1865_v41  ;;  %v1942_v31 = vld [vmem:[%s2794_s1 + $0x424] ss:$16 sps:$4 sm:$0xff]   ;;  %v1940_v35 = vld [vmem:[%s2794_s1 + $0x420] ss:$16 sps:$4 sm:$0xff]  }
  0x2a   :  { %v2442_v32 = vld [vmem:[%s2793_s0 + $0x10] sm:$0xff] }
  0x2b   :  { %1267 = vmatpush2.bf16.msra.mxu0 %v1867_v42  ;;  %v2446_v33 = vcombine.high %v2442_v32, %v2442_v32  ;;  %v1948_v37 = vld [vmem:[%s2794_s1 + $0x404] ss:$16 sps:$4 sm:$0xff]   ;;  %v1946_v39 = vld [vmem:[%s2794_s1 + $0x400] ss:$16 sps:$4 sm:$0xff]   ;;  %v1949_v42 = vld [vmem:[%s2794_s1 + $0x28] ss:$16 sps:$4 sm:$0xff]  }
  0x2c   :  { %1308 = vmatpush2.bf16.msra.mxu1 %v1868_v43  ;;  %1268 = vmatprep.subr.bf16.mxu0 %v1869_v44  ;;  %v1954_v41 = vld [vmem:[%s2794_s1 + $0x5e4] ss:$16 sps:$4 sm:$0xff]   ;;  %v1952_v43 = vld [vmem:[%s2794_s1 + $0x5e0] ss:$16 sps:$4 sm:$0xff]   ;;  %v1957_v44 = vld [vmem:[%s2794_s1 + $0xc] ss:$16 sps:$4 sm:$0xff]  }
  0x2d   :  { %1309 = vmatprep.subr.bf16.mxu1 %v1871_v45  ;;  %v1960_v45 = vld [vmem:[%s2794_s1 + $0x5c4] ss:$16 sps:$4 sm:$0xff]  }
  0x2f   :  { %1269 = vmatpush2.bf16.msra.mxu0 %v1873_v49  ;;  %v1966_v49 = vld [vmem:[%s2794_s1 + $0x5a4] ss:$16 sps:$4 sm:$0xff]  }
  0x30   :  { %1310 = vmatpush2.bf16.msra.mxu1 %v1874_v50  ;;  %1270 = vmatprep.subr.bf16.mxu0 %v1875_v52  ;;  %v1961_v50 = vld [vmem:[%s2794_s1 + $0x1e8] ss:$16 sps:$4 sm:$0xff]   ;;  %v1964_v52 = vld [vmem:[%s2794_s1 + $0x5a0] ss:$16 sps:$4 sm:$0xff]  }
  0x31   :  { %1311 = vmatprep.subr.bf16.mxu1 %v1877_v53  ;;  %v1969_v53 = vld [vmem:[%s2794_s1 + $0x1cc] ss:$16 sps:$4 sm:$0xff]  }
  0x33   :  { %1271 = vmatpush2.bf16.msra.mxu0 %v1879_v54  ;;  %v1972_v54 = vld [vmem:[%s2794_s1 + $0x584] ss:$16 sps:$4 sm:$0xff]  }
  0x34   :  { %1312 = vmatpush2.bf16.msra.mxu1 %v1880_v55  ;;  %1272 = vmatprep.subr.bf16.mxu0 %v1881_v56  ;;  %v1967_v55 = vld [vmem:[%s2794_s1 + $0x1c8] ss:$16 sps:$4 sm:$0xff]   ;;  %v1970_v56 = vld [vmem:[%s2794_s1 + $0x580] ss:$16 sps:$4 sm:$0xff]  }
  0x35   :  { %1313 = vmatprep.subr.bf16.mxu1 %v1883_v57  ;;  %v1975_v57 = vld [vmem:[%s2794_s1 + $0x1ac] ss:$16 sps:$4 sm:$0xff]  }
  0x37   :  { %1273 = vmatpush2.bf16.msra.mxu0 %v1885_v58  ;;  %v1978_v58 = vld [vmem:[%s2794_s1 + $0x564] ss:$16 sps:$4 sm:$0xff]  }
  0x38   :  { %1314 = vmatpush2.bf16.msra.mxu1 %v1886_v59  ;;  %1274 = vmatprep.subr.bf16.mxu0 %v1887_v60  ;;  %v1973_v59 = vld [vmem:[%s2794_s1 + $0x1a8] ss:$16 sps:$4 sm:$0xff]   ;;  %v1976_v60 = vld [vmem:[%s2794_s1 + $0x560] ss:$16 sps:$4 sm:$0xff]  }
  0x39   :  { %1315 = vmatprep.subr.bf16.mxu1 %v1889_v61  ;;  %v1981_v61 = vld [vmem:[%s2794_s1 + $0x18c] ss:$16 sps:$4 sm:$0xff]  }
  0x3b   :  { %1275 = vmatpush2.bf16.msra.mxu0 %v1891_v62  ;;  %v1984_v62 = vld [vmem:[%s2794_s1 + $0x544] ss:$16 sps:$4 sm:$0xff]  }
  0x3c   :  { %1316 = vmatpush2.bf16.msra.mxu1 %v1892_v63  ;;  %1276 = vmatprep.subr.bf16.mxu0 %v1893_v0  ;;  %v1979_v63 = vld [vmem:[%s2794_s1 + $0x188] ss:$16 sps:$4 sm:$0xff]   ;;  %v1982_v0 = vld [vmem:[%s2794_s1 + $0x540] ss:$16 sps:$4 sm:$0xff]  }
  0x3d   :  { %1317 = vmatprep.subr.bf16.mxu1 %v1895_v1  ;;  %v1987_v1 = vld [vmem:[%s2794_s1 + $0x16c] ss:$16 sps:$4 sm:$0xff]  }
  0x3f   :  { %1277 = vmatpush2.bf16.msra.mxu0 %v1897_v2  ;;  %v1990_v2 = vld [vmem:[%s2794_s1 + $0x524] ss:$16 sps:$4 sm:$0xff]  }
  0x40   :  { %1318 = vmatpush2.bf16.msra.mxu1 %v1898_v3  ;;  %1328 = vmatprep.subr.bf16.mxu0 %v1905_v4  ;;  %v1985_v3 = vld [vmem:[%s2794_s1 + $0x168] ss:$16 sps:$4 sm:$0xff]   ;;  %v1988_v4 = vld [vmem:[%s2794_s1 + $0x520] ss:$16 sps:$4 sm:$0xff]  }
  0x41   :  { %1383 = vmatprep.subr.bf16.mxu1 %v1908_v5  ;;  %v1993_v5 = vld [vmem:[%s2794_s1 + $0x14c] ss:$16 sps:$4 sm:$0xff]  }
  0x42   :  { %1279 = vmatmul.mubr.bf16.vlgmr.msra.gmra.mxu0 %v2358_v6 }
  0x43   :  { %1320 = vmatmul.mubr.bf16.vlgmr.msra.gmra.mxu1 %v2360_v7  ;;  %1329 = vmatpush1.bf16.msra.mxu0 %v1903_v8  ;;  %v1996_v8 = vld [vmem:[%s2794_s1 + $0x504] ss:$16 sps:$4 sm:$0xff]  }
  0x44   :  { %1384 = vmatpush1.bf16.msra.mxu1 %v1906_v9  ;;  %1330 = vmatprep.subr.bf16.mxu0 %v1911_v10  ;;  %v1991_v9 = vld [vmem:[%s2794_s1 + $0x148] ss:$16 sps:$4 sm:$0xff]   ;;  %v1994_v10 = vld [vmem:[%s2794_s1 + $0x500] ss:$16 sps:$4 sm:$0xff]  }
  0x45   :  { %1401 = vmatprep.mubr.bf16.mxu1 %v2126_v13  ;;  %1410 = vmatprep.subr.bf16.mxu1 %v1914_v11  ;;  %v2001_v11 = vld [vmem:[%s2794_s1 + $0x12c] ss:$16 sps:$4 sm:$0xff]  }
  0x46   :  { %1360 = vmatprep.mubr.bf16.mxu0 %v2446_v33 }
  0x47   :  { %1331 = vmatpush1.bf16.msra.mxu0 %v1909_v12  ;;  %v2004_v12 = vld [vmem:[%s2794_s1 + $0x2ec] ss:$16 sps:$4 sm:$0xff]  }
  0x48   :  { %1332 = vmatprep.subr.bf16.mxu0 %v1917_v14  ;;  %v2571_v14 = vcombine.low %v2442_v32, %v2442_v32 }
  0x4b   :  { %1799 = vmatmul.mubr.msk.bf16.vlgmr.msra.gmra.mxu1 %vm1242_vm0, %v2392_v17  ;;  %1333 = vmatpush1.bf16.msra.mxu0 %v1915_v16  ;;  %v2002_v16 = vld [vmem:[%s2794_s1 + $0x2e8] ss:$16 sps:$4 sm:$0xff]  }
  0x4c   :  { %1411 = vmatpush1.bf16.msra.mxu1 %v1912_v15  ;;  %1334 = vmatprep.subr.bf16.mxu0 %v1924_v19  ;;  %v1999_v15 = vld [vmem:[%s2794_s1 + $0x128] ss:$16 sps:$4 sm:$0xff]   ;;  %v2010_v19 = vld [vmem:[%s2794_s1 + $0x2cc] ss:$16 sps:$4 sm:$0xff]  }
  0x4d   :  { %1412 = vmatprep.subr.bf16.mxu1 %v1921_v18  ;;  %1442 = vmatprep.mubr.bf16.mxu1 %v2289_v47  ;;  %v1958_v47 = vld [vmem:[%s2794_s1 + $0x5c0] ss:$16 sps:$4 sm:$0xff]   ;;  %v2007_v18 = vld [vmem:[%s2794_s1 + $0x10c] ss:$16 sps:$4 sm:$0xff]  }
  0x4f   :  { %1335 = vmatpush1.bf16.msra.mxu0 %v1922_v21  ;;  %v2008_v21 = vld [vmem:[%s2794_s1 + $0x2c8] ss:$16 sps:$4 sm:$0xff]  }
  0x50   :  { %1413 = vmatpush1.bf16.msra.mxu1 %v1919_v20  ;;  %1336 = vmatprep.subr.bf16.mxu0 %v1930_v23  ;;  %v2005_v20 = vld [vmem:[%s2794_s1 + $0x108] ss:$16 sps:$4 sm:$0xff]  }
  0x51   :  { %1414 = vmatprep.subr.bf16.mxu1 %v1927_v22 }
  0x53   :  { %1337 = vmatpush1.bf16.msra.mxu0 %v1928_v25 }
  0x54   :  { %1415 = vmatpush1.bf16.msra.mxu1 %v1925_v24  ;;  %1338 = vmatprep.subr.bf16.mxu0 %v1936_v27 }
  0x55   :  { %1416 = vmatprep.subr.bf16.mxu1 %v1933_v26 }
  0x57   :  { %1339 = vmatpush1.bf16.msra.mxu0 %v1934_v29 }
  0x58   :  { %1417 = vmatpush1.bf16.msra.mxu1 %v1931_v28  ;;  %1340 = vmatprep.subr.bf16.mxu0 %v1942_v31 }
  0x59   :  { %1418 = vmatprep.subr.bf16.mxu1 %v1939_v30 }
  0x5b   :  { %1341 = vmatpush1.bf16.msra.mxu0 %v1940_v35 }
  0x5c   :  { %1419 = vmatpush1.bf16.msra.mxu1 %v1937_v34  ;;  %1342 = vmatprep.subr.bf16.mxu0 %v1948_v37 }
  0x5d   :  { %1420 = vmatprep.subr.bf16.mxu1 %v1945_v36 }
  0x5f   :  { %1343 = vmatpush1.bf16.msra.mxu0 %v1946_v39 }
  0x60   :  { %1421 = vmatpush1.bf16.msra.mxu1 %v1943_v38  ;;  %1344 = vmatprep.subr.bf16.mxu0 %v1954_v41 }
  0x61   :  { %1422 = vmatprep.subr.bf16.mxu1 %v1951_v40 }
  0x63   :  { %1345 = vmatpush2.bf16.msra.mxu0 %v1952_v43 }
  0x64   :  { %1423 = vmatpush1.bf16.msra.mxu1 %v1949_v42  ;;  %1346 = vmatprep.subr.bf16.mxu0 %v1960_v45 }
  0x65   :  { %1424 = vmatprep.subr.bf16.mxu1 %v1957_v44 }
  0x67   :  { %1347 = vmatpush2.bf16.msra.mxu0 %v1958_v47 }
  0x68   :  { %1425 = vmatpush1.bf16.msra.mxu1 %v1955_v46  ;;  %1348 = vmatprep.subr.bf16.mxu0 %v1966_v49 }
  0x69   :  { %1426 = vmatprep.subr.bf16.mxu1 %v1963_v48 }
  0x6b   :  { %1349 = vmatpush2.bf16.msra.mxu0 %v1964_v52 }
  0x6c   :  { %1427 = vmatpush2.bf16.msra.mxu1 %v1961_v50  ;;  %1350 = vmatprep.subr.bf16.mxu0 %v1972_v54 }
  0x6d   :  { %1428 = vmatprep.subr.bf16.mxu1 %v1969_v53 }
  0x6f   :  { %1351 = vmatpush2.bf16.msra.mxu0 %v1970_v56 }
  0x70   :  { %1429 = vmatpush2.bf16.msra.mxu1 %v1967_v55  ;;  %1352 = vmatprep.subr.bf16.mxu0 %v1978_v58 }
  0x71   :  { %1430 = vmatprep.subr.bf16.mxu1 %v1975_v57 }
  0x73   :  { %1353 = vmatpush2.bf16.msra.mxu0 %v1976_v60 }
  0x74   :  { %1431 = vmatpush2.bf16.msra.mxu1 %v1973_v59  ;;  %1354 = vmatprep.subr.bf16.mxu0 %v1984_v62 }
  0x75   :  { %1432 = vmatprep.subr.bf16.mxu1 %v1981_v61 }
  0x77   :  { %1355 = vmatpush2.bf16.msra.mxu0 %v1982_v0 }
  0x78   :  { %1433 = vmatpush2.bf16.msra.mxu1 %v1979_v63  ;;  %1356 = vmatprep.subr.bf16.mxu0 %v1990_v2 }
  0x79   :  { %1434 = vmatprep.subr.bf16.mxu1 %v1987_v1 }
  0x7b   :  { %1357 = vmatpush2.bf16.msra.mxu0 %v1988_v4 }
  0x7c   :  { %1435 = vmatpush2.bf16.msra.mxu1 %v1985_v3  ;;  %1358 = vmatprep.subr.bf16.mxu0 %v1996_v8 }
  0x7d   :  { %1436 = vmatprep.subr.bf16.mxu1 %v1993_v5 }
  0x7f   :  { %1359 = vmatpush2.bf16.msra.mxu0 %v1994_v10 }
  0x80   :  { %1437 = vmatpush2.bf16.msra.mxu1 %v1991_v9  ;;  %1451 = vmatprep.subr.bf16.mxu0 %v2004_v12 }
  0x81   :  { %1438 = vmatprep.subr.bf16.mxu1 %v2001_v11 }
  0x82   :  { %1361 = vmatmul.mubr.bf16.vlgmr.msra.gmra.mxu0 %v2571_v14 }
  0x83   :  { %1452 = vmatpush1.bf16.msra.mxu0 %v2002_v16 }
  0x84   :  { %1439 = vmatpush2.bf16.msra.mxu1 %v1999_v15 }
  0x85   :  { %8 = vsyncpa [#allocation3], 0  ;;  %1440 = vmatprep.subr.bf16.mxu1 %v2007_v18  ;;  %1453 = vmatprep.subr.bf16.mxu0 %v2010_v19  ;;  %v2013_v22 = vld [vmem:[%s2794_s1 + $0x4ec] ss:$16 sps:$4 sm:$0xff]   ;;  %v2011_v24 = vld [vmem:[%s2794_s1 + $0x4e8] ss:$16 sps:$4 sm:$0xff]  }
  0x86   :  { %v2016_v23 = vld [vmem:[%s2794_s1 + $0x2ac] ss:$16 sps:$4 sm:$0xff]   ;;  %1483 = vmatprep.mubr.bf16.mxu0 %v2300_v51  ;;  %v2014_v25 = vld [vmem:[%s2794_s1 + $0x2a8] ss:$16 sps:$4 sm:$0xff]  }
  0x87   :  { %1454 = vmatpush1.bf16.msra.mxu0 %v2008_v21  ;;  %v2019_v26 = vld [vmem:[%s2794_s1 + $0x4cc] ss:$16 sps:$4 sm:$0xff]   ;;  %v2017_v27 = vld [vmem:[%s2794_s1 + $0x4c8] ss:$16 sps:$4 sm:$0xff]  }
  0x88   :  { %1441 = vmatpush2.bf16.msra.mxu1 %v2005_v20  ;;  %1455 = vmatprep.subr.bf16.mxu0 %v2016_v23  ;;  %v2022_v51 = vld [vmem:[%s2794_s1 + $0x28c] ss:$16 sps:$4 sm:$0xff]   ;;  %v2020_v28 = vld [vmem:[%s2794_s1 + $0x288] ss:$16 sps:$4 sm:$0xff]  }
  0x89   :  { %1492 = vmatprep.subr.bf16.mxu1 %v2013_v22  ;;  %v2025_v29 = vld [vmem:[%s2794_s1 + $0x4ac] ss:$16 sps:$4 sm:$0xff]   ;;  %v2023_v30 = vld [vmem:[%s2794_s1 + $0x4a8] ss:$16 sps:$4 sm:$0xff]  }
  0x8a   :  { %v2026_v31 = vld [vmem:[%s2794_s1 + $0x268] ss:$16 sps:$4 sm:$0xff]   ;;  %v2031_v32 = vld [vmem:[%s2794_s1 + $0x48c] ss:$16 sps:$4 sm:$0xff]  }
  0x8b   :  { %1443 = vmatmul.mubr.bf16.vlgmr.msra.gmra.mxu1 %v2358_v6  ;;  %1456 = vmatpush1.bf16.msra.mxu0 %v2014_v25  ;;  %v2028_v6 = vld [vmem:[%s2794_s1 + $0x26c] ss:$16 sps:$4 sm:$0xff]   ;;  %v2029_v34 = vld [vmem:[%s2794_s1 + $0x488] ss:$16 sps:$4 sm:$0xff]  }
  0x8c   :  { %1493 = vmatpush1.bf16.msra.mxu1 %v2011_v24  ;;  %1457 = vmatprep.subr.bf16.mxu0 %v2022_v51  ;;  %v2032_v35 = vld [vmem:[%s2794_s1 + $0x248] ss:$16 sps:$4 sm:$0xff]   ;;  %v2037_v36 = vld [vmem:[%s2794_s1 + $0x46c] ss:$16 sps:$4 sm:$0xff]  }
  0x8d   :  { %1494 = vmatprep.subr.bf16.mxu1 %v2019_v26  ;;  %1524 = vmatprep.mubr.bf16.mxu1 %v2446_v33  ;;  %v2034_v33 = vld [vmem:[%s2794_s1 + $0x24c] ss:$16 sps:$4 sm:$0xff]   ;;  %v2035_v38 = vld [vmem:[%s2794_s1 + $0x468] ss:$16 sps:$4 sm:$0xff]  }
  0x8e   :  { %v2040_v37 = vld [vmem:[%s2794_s1 + $0x22c] ss:$16 sps:$4 sm:$0xff]   ;;  %v2038_v39 = vld [vmem:[%s2794_s1 + $0x228] ss:$16 sps:$4 sm:$0xff]  }
  0x8f   :  { %1458 = vmatpush1.bf16.msra.mxu0 %v2020_v28  ;;  %v2043_v40 = vld [vmem:[%s2794_s1 + $0x44c] ss:$16 sps:$4 sm:$0xff]   ;;  %v2041_v42 = vld [vmem:[%s2794_s1 + $0x448] ss:$16 sps:$4 sm:$0xff]  }
  0x90   :  { %1495 = vmatpush1.bf16.msra.mxu1 %v2017_v27  ;;  %1459 = vmatprep.subr.bf16.mxu0 %v2028_v6  ;;  %v2046_v41 = vld [vmem:[%s2794_s1 + $0x20c] ss:$16 sps:$4 sm:$0xff]   ;;  %v2044_v43 = vld [vmem:[%s2794_s1 + $0x208] ss:$16 sps:$4 sm:$0xff]  }
  0x91   :  { %1496 = vmatprep.subr.bf16.mxu1 %v2025_v29  ;;  %v2049_v44 = vld [vmem:[%s2794_s1 + $0x42c] ss:$16 sps:$4 sm:$0xff]   ;;  %v2047_v46 = vld [vmem:[%s2794_s1 + $0x428] ss:$16 sps:$4 sm:$0xff]  }
  0x92   :  { %v2052_v45 = vld [vmem:[%s2794_s1 + $0x3ec] ss:$16 sps:$4 sm:$0xff]   ;;  %v2050_v47 = vld [vmem:[%s2794_s1 + $0x3e8] ss:$16 sps:$4 sm:$0xff]  }
  0x93   :  { %1460 = vmatpush1.bf16.msra.mxu0 %v2026_v31  ;;  %v2055_v48 = vld [vmem:[%s2794_s1 + $0x40c] ss:$16 sps:$4 sm:$0xff]   ;;  %v2053_v50 = vld [vmem:[%s2794_s1 + $0x408] ss:$16 sps:$4 sm:$0xff]  }
  0x94   :  { %1497 = vmatpush1.bf16.msra.mxu1 %v2023_v30  ;;  %1461 = vmatprep.subr.bf16.mxu0 %v2034_v33  ;;  %v2058_v49 = vld [vmem:[%s2794_s1 + $0x3cc] ss:$16 sps:$4 sm:$0xff]   ;;  %v2056_v52 = vld [vmem:[%s2794_s1 + $0x3c8] ss:$16 sps:$4 sm:$0xff]   ;;  %v218_v33 = vlaneseq }
  0x95   :  { %1498 = vmatprep.subr.bf16.mxu1 %v2031_v32  ;;  %v2061_v53 = vld [vmem:[%s2794_s1 + $0x5ec] ss:$16 sps:$4 sm:$0xff]   ;;  %v2059_v55 = vld [vmem:[%s2794_s1 + $0x5e8] ss:$16 sps:$4 sm:$0xff]  }
  0x96   :  { %v2064_v54 = vld [vmem:[%s2794_s1 + $0x3ac] ss:$16 sps:$4 sm:$0xff]   ;;  %v2062_v56 = vld [vmem:[%s2794_s1 + $0x3a8] ss:$16 sps:$4 sm:$0xff]  }
  0x97   :  { %1462 = vmatpush1.bf16.msra.mxu0 %v2032_v35  ;;  %v2067_v57 = vld [vmem:[%s2794_s1 + $0x5cc] ss:$16 sps:$4 sm:$0xff]   ;;  %v2065_v59 = vld [vmem:[%s2794_s1 + $0x5c8] ss:$16 sps:$4 sm:$0xff]  }
  0x98   :  { %1499 = vmatpush1.bf16.msra.mxu1 %v2029_v34  ;;  %1463 = vmatprep.subr.bf16.mxu0 %v2040_v37  ;;  %v2070_v58 = vld [vmem:[%s2794_s1 + $0x38c] ss:$16 sps:$4 sm:$0xff]   ;;  %v2068_v60 = vld [vmem:[%s2794_s1 + $0x388] ss:$16 sps:$4 sm:$0xff]  }
  0x99   :  { %1500 = vmatprep.subr.bf16.mxu1 %v2037_v36  ;;  %v2073_v61 = vld [vmem:[%s2794_s1 + $0x5ac] ss:$16 sps:$4 sm:$0xff]   ;;  %v2071_v63 = vld [vmem:[%s2794_s1 + $0x5a8] ss:$16 sps:$4 sm:$0xff]  }
  0x9a   :  { %v2076_v62 = vld [vmem:[%s2794_s1 + $0x36c] ss:$16 sps:$4 sm:$0xff]   ;;  %v2074_v0 = vld [vmem:[%s2794_s1 + $0x368] ss:$16 sps:$4 sm:$0xff]  }
  0x9b   :  { %1464 = vmatpush1.bf16.msra.mxu0 %v2038_v39  ;;  %v2079_v1 = vld [vmem:[%s2794_s1 + $0x58c] ss:$16 sps:$4 sm:$0xff]   ;;  %v2077_v3 = vld [vmem:[%s2794_s1 + $0x588] ss:$16 sps:$4 sm:$0xff]  }
  0x9c   :  { %1501 = vmatpush1.bf16.msra.mxu1 %v2035_v38  ;;  %1465 = vmatprep.subr.bf16.mxu0 %v2046_v41  ;;  %v2082_v2 = vld [vmem:[%s2794_s1 + $0x34c] ss:$16 sps:$4 sm:$0xff]   ;;  %v2080_v4 = vld [vmem:[%s2794_s1 + $0x348] ss:$16 sps:$4 sm:$0xff]  }
  0x9d   :  { %1502 = vmatprep.subr.bf16.mxu1 %v2043_v40  ;;  %v2085_v5 = vld [vmem:[%s2794_s1 + $0x56c] ss:$16 sps:$4 sm:$0xff]   ;;  %v2083_v9 = vld [vmem:[%s2794_s1 + $0x568] ss:$16 sps:$4 sm:$0xff]  }
  0x9e   :  { %v2088_v8 = vld [vmem:[%s2794_s1 + $0x32c] ss:$16 sps:$4 sm:$0xff]   ;;  %v2086_v10 = vld [vmem:[%s2794_s1 + $0x328] ss:$16 sps:$4 sm:$0xff]  }
  0x9f   :  { %1466 = vmatpush1.bf16.msra.mxu0 %v2044_v43  ;;  %v2091_v11 = vld [vmem:[%s2794_s1 + $0x54c] ss:$16 sps:$4 sm:$0xff]   ;;  %v2089_v15 = vld [vmem:[%s2794_s1 + $0x548] ss:$16 sps:$4 sm:$0xff]  }
  0xa0   :  { %1503 = vmatpush1.bf16.msra.mxu1 %v2041_v42  ;;  %1467 = vmatprep.subr.bf16.mxu0 %v2052_v45  ;;  %v2094_v12 = vld [vmem:[%s2794_s1 + $0x30c] ss:$16 sps:$4 sm:$0xff]   ;;  %v2092_v16 = vld [vmem:[%s2794_s1 + $0x308] ss:$16 sps:$4 sm:$0xff]  }
  0xa1   :  { %1504 = vmatprep.subr.bf16.mxu1 %v2049_v44  ;;  %v2097_v18 = vld [vmem:[%s2794_s1 + $0x52c] ss:$16 sps:$4 sm:$0xff]   ;;  %v2095_v20 = vld [vmem:[%s2794_s1 + $0x528] ss:$16 sps:$4 sm:$0xff]  }
  0xa2   :  { %v2100_v19 = vld [vmem:[%s2794_s1 + $0x60c] ss:$16 sps:$4 sm:$0xff]   ;;  %v2098_v21 = vld [vmem:[%s2794_s1 + $0x608] ss:$16 sps:$4 sm:$0xff]  }
  0xa3   :  { %1468 = vmatpush2.bf16.msra.mxu0 %v2050_v47  ;;  %v2103_v22 = vld [vmem:[%s2794_s1 + $0x50c] ss:$16 sps:$4 sm:$0xff]   ;;  %v2101_v23 = vld [vmem:[%s2794_s1 + $0x508] ss:$16 sps:$4 sm:$0xff]  }
  0xa4   :  { %1505 = vmatpush1.bf16.msra.mxu1 %v2047_v46  ;;  %1469 = vmatprep.subr.bf16.mxu0 %v2058_v49 }
  0xa5   :  { %1506 = vmatprep.subr.bf16.mxu1 %v2055_v48 }
  0xa7   :  { %1470 = vmatpush2.bf16.msra.mxu0 %v2056_v52 }
  0xa8   :  { %1507 = vmatpush1.bf16.msra.mxu1 %v2053_v50  ;;  %1471 = vmatprep.subr.bf16.mxu0 %v2064_v54 }
  0xa9   :  { %1508 = vmatprep.subr.bf16.mxu1 %v2061_v53 }
  0xab   :  { %1472 = vmatpush2.bf16.msra.mxu0 %v2062_v56 }
  0xac   :  { %1509 = vmatpush2.bf16.msra.mxu1 %v2059_v55  ;;  %1473 = vmatprep.subr.bf16.mxu0 %v2070_v58 }
  0xad   :  { %1510 = vmatprep.subr.bf16.mxu1 %v2067_v57 }
  0xaf   :  { %1474 = vmatpush2.bf16.msra.mxu0 %v2068_v60 }
  0xb0   :  { %1511 = vmatpush2.bf16.msra.mxu1 %v2065_v59  ;;  %1475 = vmatprep.subr.bf16.mxu0 %v2076_v62 }
  0xb1   :  { %1512 = vmatprep.subr.bf16.mxu1 %v2073_v61 }
  0xb3   :  { %1476 = vmatpush2.bf16.msra.mxu0 %v2074_v0 }
  0xb4   :  { %1513 = vmatpush2.bf16.msra.mxu1 %v2071_v63  ;;  %1477 = vmatprep.subr.bf16.mxu0 %v2082_v2 }
  0xb5   :  { %1514 = vmatprep.subr.bf16.mxu1 %v2079_v1 }
  0xb7   :  { %1478 = vmatpush2.bf16.msra.mxu0 %v2080_v4 }
  0xb8   :  { %1515 = vmatpush2.bf16.msra.mxu1 %v2077_v3  ;;  %1479 = vmatprep.subr.bf16.mxu0 %v2088_v8 }
  0xb9   :  { %1516 = vmatprep.subr.bf16.mxu1 %v2085_v5 }
  0xbb   :  { %1480 = vmatpush2.bf16.msra.mxu0 %v2086_v10 }
  0xbc   :  { %1517 = vmatpush2.bf16.msra.mxu1 %v2083_v9  ;;  %1481 = vmatprep.subr.bf16.mxu0 %v2094_v12 }
  0xbd   :  { %1518 = vmatprep.subr.bf16.mxu1 %v2091_v11 }
  0xbf   :  { %1482 = vmatpush2.bf16.msra.mxu0 %v2092_v16 }
  0xc0   :  { %1519 = vmatpush2.bf16.msra.mxu1 %v2089_v15  ;;  %1547 = vmatprep.subr.bf16.mxu0 %v2100_v19 }
  0xc1   :  { %1520 = vmatprep.subr.bf16.mxu1 %v2097_v18 }
  0xc2   :  { %1484 = vmatmul.mubr.bf16.vlgmr.msra.gmra.mxu0 %v2360_v7 }
  0xc3   :  { %1548 = vmatpush1.bf16.msra.mxu0 %v2098_v21  ;;  %1565 = vmatprep.mubr.bf16.mxu0 %v2126_v13  ;;  %v219_v13 = vshrl.u32 %v218_v33, 7 }
  0xc4   :  { %1521 = vmatpush2.bf16.msra.mxu1 %v2095_v20 }
  0xc5   :  { %1522 = vmatprep.subr.bf16.mxu1 %v2103_v22  ;;  %v220_v34 = vsub.s32 0, %v219_v13  ;;  %v228_v56 = vsub.s32 2, %v219_v13  ;;  %v232_v57 = vsub.s32 3, %v219_v13 }
  0xc8   :  { %1523 = vmatpush2.bf16.msra.mxu1 %v2101_v23 }
  0xca   :  { %1800 = vmatmul.mubr.msk.bf16.vlgmr.msra.gmra.mxu0 %vm1242_vm0, %v2392_v17  ;;  %v224_v17 = vsub.s32 1, %v219_v13 }
  0xcb   :  { %1525 = vmatmul.mubr.bf16.vlgmr.msra.gmra.mxu1 %v2571_v14  ;;  %v216_v14 = vld [vmem:[%s2795_s2] sm:$0xf]  ;;  %s2127_s2 = smov [#allocation2]  }
  0xcc   :  { %v221_v35 = vrot.slane %v216_v14, %v220_v34  ;;  %v225_v36 = vrot.slane %v216_v14, %v224_v17  ;;  %v229_v59 = vrot.slane %v216_v14, %v228_v56  ;;  %v233_v61 = vrot.slane %v216_v14, %v232_v57  ;;  %s1588_s27 = sshll.u32 %s2127_s2, 4  ;;  %s1589_s27 = int_to_ptr.vmem [resolvable:$true] %s1588_s27 }
  0xcd   :  { %s2104_s28 = scalar_lea.vmem %s1589_s27, 512  ;;  %p2109_p1 = scmp.lt.s32.totalorder %s1589_s27, %s1589_s27 }
  0xce   :  { %p2105_p0 = scmp.ne.s32.totalorder %s1589_s27, %s2104_s28  ;;  %p2110_p2 = scmp.lt.s32.totalorder %s2104_s28, %s2104_s28 }
  0xd0   :  { %p2111_p3 = por %p2110_p2, %p2109_p1 }
  0xd2   :  { %p2112_p4 = pnand %p2111_p3, %p2105_p0 }
 0x102   :  { %v1280_v24 = vpop.f32.mrf.mxu0 }
 0x103   :  { %v1321_v25 = vpop.f32.mrf.mxu1  ;;  %v1281_v37 = vadd.f32 %v1280_v24, %v221_v35 }
 0x104   :  { %v1282_v26 = vpop.f32.mrf.mxu0 }
 0x105   :  { %v1323_v51 = vpop.f32.mrf.mxu1  ;;  %v1283_v38 = vadd.f32 %v1282_v26, %v225_v36  ;;  %v1322_v39 = vadd.f32 %v1321_v25, %v1281_v37 }
 0x106   :  { %v1284_v7 = vpop.f32.mrf.mxu0 }
 0x107   :  { %v1325_v27 = vpop.f32.mrf.mxu1  ;;  %v1324_v41 = vadd.f32 %v1323_v51, %v1283_v38 }
 0x108   :  { %v1285_v28 = vpop.f32.mrf.mxu0 }
 0x109   :  { %v1326_v29 = vpop.f32.mrf.mxu1 }
 0x10b   :  { %v1403_v6 = vpop.f32.mrf.mxu1 }
 0x10d   :  { %v1405_v30 = vpop.f32.mrf.mxu1 }
 0x10f   :  { %v1407_v31 = vpop.f32.mrf.mxu1 }
 0x111   :  { %v1408_v32 = vpop.f32.mrf.mxu1 }
 0x142   :  { %v1362_v40 = vpop.f32.mrf.mxu0 }
 0x143   :  { %v1363_v42 = vadd.f32 %v1362_v40, %v1322_v39 }
 0x144   :  { %v1364_v43 = vpop.f32.mrf.mxu0 }
 0x145   :  { %v1404_v44 = vadd.f32 %v1403_v6, %v1363_v42  ;;  %v1365_v45 = vadd.f32 %v1364_v43, %v1324_v41 }
 0x146   :  { %v1366_v46 = vpop.f32.mrf.mxu0 }
 0x147   :  { %v1574_v47 = vmax.f32 %v1404_v44, 0.0  ;;  %v1406_v48 = vadd.f32 %v1405_v30, %v1365_v45 }
 0x148   :  { %v1367_v49 = vpop.f32.mrf.mxu0 }
 0x149   :  { %1578 = vst [vmem:[#allocation2] sm:$0xff] %v1574_v47  ;;  %v1575_v50 = vmax.f32 %v1406_v48, 0.0 }
 0x14b   :  { %v1444_v52 = vpop.f32.mrf.mxu1  ;;  %1579 = vst [vmem:[#allocation2 + $0x8] sm:$0xff] %v1575_v50 }
 0x14c   :  { %v1445_v63 = vadd.f32 %v1444_v52, %v229_v59 }
 0x14d   :  { %v1446_v53 = vpop.f32.mrf.mxu1 }
 0x14e   :  { %v1447_v1 = vadd.f32 %v1446_v53, %v233_v61 }
 0x14f   :  { %v1448_v54 = vpop.f32.mrf.mxu1 }
 0x151   :  { %v1449_v55 = vpop.f32.mrf.mxu1 }
 0x182   :  { %v1485_v58 = vpop.f32.mrf.mxu0 }
 0x183   :  { %v1486_v2 = vadd.f32 %v1485_v58, %v1445_v63 }
 0x184   :  { %v1487_v60 = vpop.f32.mrf.mxu0 }
 0x185   :  { %v1488_v5 = vadd.f32 %v1487_v60, %v1447_v1 }
 0x186   :  { %v1489_v62 = vpop.f32.mrf.mxu0 }
 0x188   :  { %v1490_v0 = vpop.f32.mrf.mxu0 }
 0x18a   :  { %v1567_v4 = vpop.f32.mrf.mxu0 }
 0x18b   :  { %v1526_v3 = vpop.f32.mrf.mxu1 }
 0x18c   :  { %v1527_v8 = vadd.f32 %v1526_v3, %v1486_v2  ;;  %v1569_v10 = vpop.f32.mrf.mxu0 }
 0x18d   :  { %v1528_v9 = vpop.f32.mrf.mxu1 }
 0x18e   :  { %v1568_v11 = vadd.f32 %v1567_v4, %v1527_v8  ;;  %v1529_v12 = vadd.f32 %v1528_v9, %v1488_v5  ;;  %v1571_v16 = vpop.f32.mrf.mxu0 }
 0x18f   :  { %v1530_v15 = vpop.f32.mrf.mxu1 }
 0x190   :  { %v1576_v18 = vmax.f32 %v1568_v11, 0.0  ;;  %v1570_v19 = vadd.f32 %v1569_v10, %v1529_v12  ;;  %v1572_v21 = vpop.f32.mrf.mxu0 }
 0x191   :  { %v1531_v20 = vpop.f32.mrf.mxu1 }
 0x192   :  { %1580 = vst [vmem:[#allocation2 + $0x10] sm:$0xff] %v1576_v18  ;;  %v1577_v22 = vmax.f32 %v1570_v19, 0.0 }
 0x194   :  { %1581 = vst.msk [vmem:[#allocation2 + $0x18] sm:$0xff] %vm1242_vm0, %v1577_v22 }
 0x195   :  { %2115 = shalt.err (!%p2112_p4)
}
 0x196   :  { %1591 = dma.vmem_to_hbm [thread:$0]  %s1589_s27, 512, %s2796_s3, [#allocation3]  }
 0x197   :  { %2124 = dma.done.wait [#allocation3], 512  }
 0x198   :  { %2125 = vsyncadd [#allocation3], 4294966784 }
 0x199   :  { %1595 = vsyncpa [#allocation3], 1 }

</bundles_post_ra>
